<compile_context>
chip_gen: v7x
topology: tpu7x:2x2x1
jax: 0.10.0
libtpu: 0.0.40
codegen_flags: <defaults>
</compile_context>

<pallas_src>
import math
import functools

import jax
import jax.numpy as jnp
from jax import lax
from jax.experimental import pallas as pl
from jax.experimental.pallas import tpu as pltpu


# ----------------------------- tile helpers ----------------------------------
def _choose_tile(dim, target, align):
    """Largest tile <= target that divides `dim` and is `align`-aligned,
    falling back to the full dim (always legal: block == full array dim)."""
    if dim <= target:
        return dim
    t = (target // align) * align
    while t >= align:
        if dim % t == 0:
            return t
        t -= align
    return dim


# ------------------------- tiled matmul + bias kernel -------------------------
def _matmul_bias_kernel(x_ref, w_ref, b_ref, o_ref, acc_ref, *, k_axis):
    # x: (tm, tk), w: (tk, tn) [pre-transposed, lane-dense], b: (1, tn)
    k = pl.program_id(k_axis)

    @pl.when(k == 0)
    def _init():
        acc_ref[...] = jnp.zeros_like(acc_ref)

    acc_ref[...] += jnp.dot(x_ref[...], w_ref[...],
                            preferred_element_type=jnp.float32)

    @pl.when(k == pl.num_programs(k_axis) - 1)
    def _finalize():
        o_ref[...] = (acc_ref[...] + b_ref[...]).astype(o_ref.dtype)


def pallas_linear(x, w_t, b, *, tm_target=256, tn_target=256, tk_target=512):
    """x: (M, K) @ w_t (K, N) + b (N,) -> (M, N), tiled + pipelined."""
    m, kd = x.shape
    n = w_t.shape[1]
    tm = _choose_tile(m, tm_target, 8)
    tn = _choose_tile(n, tn_target, 128)
    tk = _choose_tile(kd, tk_target, 128)
    grid = (m // tm, n // tn, kd // tk)
    kern = functools.partial(_matmul_bias_kernel, k_axis=2)
    return pl.pallas_call(
        kern,
        out_shape=jax.ShapeDtypeStruct((m, n), jnp.float32),
        grid=grid,
        in_specs=[
            pl.BlockSpec((tm, tk), lambda i, j, k: (i, k)),
            pl.BlockSpec((tk, tn), lambda i, j, k: (k, j)),
            pl.BlockSpec((1, tn), lambda i, j, k: (0, j)),
        ],
        out_specs=pl.BlockSpec((tm, tn), lambda i, j, k: (i, j)),
        scratch_shapes=[pltpu.VMEM((tm, tn), jnp.float32)],
        compiler_params=pltpu.CompilerParams(
            dimension_semantics=("parallel", "parallel", "arbitrary")),
    )(x, w_t, b.reshape(1, n))


def pallas_qkv_proj(xs, ws_t, bs, *, tm_target=256, tn_target=256, tk_target=512):
    """Fused Q/K/V projections in a single pallas_call.

    xs: (3, M, K) stacked [query, key, value] activations
    ws_t: (3, K, N) stacked pre-transposed weights
    bs:  (3, 1, N) stacked biases
    returns (3, M, N)
    """
    p, m, kd = xs.shape
    n = ws_t.shape[2]
    tm = _choose_tile(m, tm_target, 8)
    tn = _choose_tile(n, tn_target, 128)
    tk = _choose_tile(kd, tk_target, 128)
    grid = (p, m // tm, n // tn, kd // tk)
    kern = functools.partial(_matmul_bias_kernel, k_axis=3)
    return pl.pallas_call(
        kern,
        out_shape=jax.ShapeDtypeStruct((p, m, n), jnp.float32),
        grid=grid,
        in_specs=[
            pl.BlockSpec((pl.Squeezed(), tm, tk), lambda pi, i, j, k: (pi, i, k)),
            pl.BlockSpec((pl.Squeezed(), tk, tn), lambda pi, i, j, k: (pi, k, j)),
            pl.BlockSpec((pl.Squeezed(), 1, tn), lambda pi, i, j, k: (pi, 0, j)),
        ],
        out_specs=pl.BlockSpec((pl.Squeezed(), tm, tn),
                               lambda pi, i, j, k: (pi, i, j)),
        scratch_shapes=[pltpu.VMEM((tm, tn), jnp.float32)],
        compiler_params=pltpu.CompilerParams(
            dimension_semantics=("parallel", "parallel", "parallel", "arbitrary")),
    )(xs, ws_t, bs)


# --------------------------- flash attention kernel ---------------------------
_NEG_INIT = -1.0e30  # large finite (avoids inf-inf NaNs for fully-masked tiles)


def _flash_attn_kernel(*refs, scale, has_mask):
    if has_mask:
        q_ref, k_ref, v_ref, mask_ref, o_ref, m_sc, l_sc, acc_sc = refs
    else:
        q_ref, k_ref, v_ref, o_ref, m_sc, l_sc, acc_sc = refs
        mask_ref = None

    ki = pl.program_id(2)

    @pl.when(ki == 0)
    def _init():
        m_sc[...] = jnp.full_like(m_sc, _NEG_INIT)
        l_sc[...] = jnp.zeros_like(l_sc)
        acc_sc[...] = jnp.zeros_like(acc_sc)

    # Fold 1/sqrt(head_dim) into the (tq, D) q tile (cheaper than scaling scores).
    q = q_ref[...] * scale
    s = lax.dot_general(q, k_ref[...],
                        dimension_numbers=(((1,), (1,)), ((), ())),
                        preferred_element_type=jnp.float32)
    if mask_ref is not None:
        s = s + mask_ref[...]

    m_prev = m_sc[...]
    m_new = jnp.maximum(m_prev, jnp.max(s, axis=-1, keepdims=True))
    alpha = jnp.exp(m_prev - m_new)
    p = jnp.exp(s - m_new)
    l_sc[...] = alpha * l_sc[...] + jnp.sum(p, axis=-1, keepdims=True)
    acc_sc[...] = alpha * acc_sc[...] + jnp.dot(p, v_ref[...],
                                                preferred_element_type=jnp.float32)
    m_sc[...] = m_new

    @pl.when(ki == pl.num_programs(2) - 1)
    def _finalize():
        # Exact division keeps 1e-4 parity with the reference; swap to
        # pl.reciprocal(l_sc[...], approx=True) for inference-grade speed.
        o_ref[...] = (acc_sc[...] / l_sc[...]).astype(o_ref.dtype)


def _canonicalize_mask(attn_mask, bsz, num_heads, tgt_len, src_len):
    """Return (mask_array, index_map) WITHOUT materializing (B,H,L,S) when
    the mask is broadcastable — the index_map reuses VMEM blocks instead."""
    m = attn_mask.astype(jnp.float32)
    if m.ndim == 2:                                   # (L, S)
        return m.reshape(1, tgt_len, src_len), (lambda bh, qi, ki: (0, qi, ki))
    if m.ndim == 3:                                   # (B*H, L, S)
        return m, (lambda bh, qi, ki: (bh, qi, ki))
    if m.ndim == 4:
        b4, h4 = m.shape[0], m.shape[1]
        if b4 == 1 and h4 == 1:                       # (1, 1, L, S)
            return m.reshape(1, tgt_len, src_len), (lambda bh, qi, ki: (0, qi, ki))
        if h4 == 1:                                   # (B, 1, L, S)
            return (m.reshape(bsz, tgt_len, src_len),
                    (lambda bh, qi, ki: (bh // num_heads, qi, ki)))
        if b4 == 1:                                   # (1, H, L, S)
            return (m.reshape(num_heads, tgt_len, src_len),
                    (lambda bh, qi, ki: (bh % num_heads, qi, ki)))
        # fully batched (B, H, L, S) — already full size, just flatten.
        full = jnp.broadcast_to(m, (bsz, num_heads, tgt_len, src_len))
        return (full.reshape(bsz * num_heads, tgt_len, src_len),
                (lambda bh, qi, ki: (bh, qi, ki)))
    raise ValueError("unsupported attn_mask rank")


def pallas_flash_attention(q, k, v, attn_mask, scale, bsz, num_heads,
                           *, tq_target=256, tkv_target=512):
    """q: (B*H, L, D), k/v: (B*H, S, D) -> (B*H, L, D)."""
    bh, l, d = q.shape
    s = k.shape[1]
    tq = _choose_tile(l, tq_target, 8)
    tkv = _choose_tile(s, tkv_target, 128)
    grid = (bh, l // tq, s // tkv)

    in_specs = [
        pl.BlockSpec((pl.Squeezed(), tq, d), lambda bhi, qi, ki: (bhi, qi, 0)),
        pl.BlockSpec((pl.Squeezed(), tkv, d), lambda bhi, qi, ki: (bhi, ki, 0)),
        pl.BlockSpec((pl.Squeezed(), tkv, d), lambda bhi, qi, ki: (bhi, ki, 0)),
    ]
    inputs = [q, k, v]
    has_mask = attn_mask is not None
    if has_mask:
        mask, mask_map = _canonicalize_mask(attn_mask, bsz, num_heads, l, s)
        in_specs.append(pl.BlockSpec((pl.Squeezed(), tq, tkv), mask_map))
        inputs.append(mask)

    kern = functools.partial(_flash_attn_kernel, scale=scale, has_mask=has_mask)
    return pl.pallas_call(
        kern,
        out_shape=jax.ShapeDtypeStruct((bh, l, d), jnp.float32),
        grid=grid,
        in_specs=in_specs,
        out_specs=pl.BlockSpec((pl.Squeezed(), tq, d),
                               lambda bhi, qi, ki: (bhi, qi, 0)),
        scratch_shapes=[
            pltpu.VMEM((tq, 1), jnp.float32),   # running max
            pltpu.VMEM((tq, 1), jnp.float32),   # running sum
            pltpu.VMEM((tq, d), jnp.float32),   # output accumulator
        ],
        compiler_params=pltpu.CompilerParams(
            dimension_semantics=("parallel", "parallel", "arbitrary")),
    )(*inputs)


# ------------------------------ Full forward ---------------------------------
def plain_mha_forward(query, key, value, params, num_heads, attn_mask=None):
    """
    query/key/value: (seq_len, batch, embed_dim)  (batch_first=False convention)
    attn_mask: additive, broadcastable to (batch, num_heads, tgt_len, src_len)
    Returns: (tgt_len, batch, embed_dim)
    """
    tgt_len, bsz, embed_dim = query.shape
    src_len = key.shape[0]
    head_dim = embed_dim // num_heads

    # Pre-transpose torch-layout (OUT, IN) weights once -> lane-dense (IN, OUT).
    wq_t = params["wq"].T
    wk_t = params["wk"].T
    wv_t = params["wv"].T
    wo_t = params["wo"].T

    q2 = query.reshape(tgt_len * bsz, query.shape[-1])
    k2 = key.reshape(src_len * bsz, key.shape[-1])
    v2 = value.reshape(src_len * bsz, value.shape[-1])

    fuse_qkv = (q2.shape == k2.shape == v2.shape
                and wq_t.shape == wk_t.shape == wv_t.shape)
    if fuse_qkv:
        xs = jnp.stack([q2, k2, v2])                              # (3, M, E)
        ws = jnp.stack([wq_t, wk_t, wv_t])                        # (3, E, E)
        bs = jnp.stack([params["bq"], params["bk"], params["bv"]]
                       ).reshape(3, 1, embed_dim)
        qkv = pallas_qkv_proj(xs, ws, bs)                         # (3, M, E)
        q, k, v = qkv[0], qkv[1], qkv[2]
    else:
        q = pallas_linear(q2, wq_t, params["bq"])
        k = pallas_linear(k2, wk_t, params["bk"])
        v = pallas_linear(v2, wv_t, params["bv"])

    # (L*B, E) -> (B*H, L, Dh)   (matches torch view/transpose sequence)
    # TODO(synk): fold this head-split transpose into the projection out_spec
    # once head_dim is a 128 multiple (BlockSpec lane alignment permitting).
    q = q.reshape(tgt_len, bsz, num_heads, head_dim).transpose(1, 2, 0, 3)
    q = q.reshape(bsz * num_heads, tgt_len, head_dim)
    k = k.reshape(src_len, bsz, num_heads, head_dim).transpose(1, 2, 0, 3)
    k = k.reshape(bsz * num_heads, src_len, head_dim)
    v = v.reshape(src_len, bsz, num_heads, head_dim).transpose(1, 2, 0, 3)
    v = v.reshape(bsz * num_heads, src_len, head_dim)

    scale = 1.0 / math.sqrt(head_dim)
    attn_out = pallas_flash_attention(q, k, v, attn_mask, scale, bsz, num_heads)

    # (B*H, L, Dh) -> permute(2,0,1,3).view(L*B, E), then output projection.
    attn_out = attn_out.reshape(bsz, num_heads, tgt_len, head_dim)
    attn_out = attn_out.transpose(2, 0, 1, 3).reshape(tgt_len * bsz, embed_dim)
    out = pallas_linear(attn_out, wo_t, params["bo"])
    return out.reshape(tgt_len, bsz, embed_dim)


# Pure-JAX reference (mirrors the PyTorch forward exactly) for validation.
def reference_forward(query, key, value, params, num_heads, attn_mask=None):
    tgt_len, bsz, embed_dim = query.shape
    src_len = key.shape[0]
    head_dim = embed_dim // num_heads
    q = query @ params["wq"].T + params["bq"]
    k = key @ params["wk"].T + params["bk"]
    v = value @ params["wv"].T + params["bv"]
    q = q.reshape(tgt_len, bsz, num_heads, head_dim).transpose(1, 2, 0, 3)
    k = k.reshape(src_len, bsz, num_heads, head_dim).transpose(1, 2, 0, 3)
    v = v.reshape(src_len, bsz, num_heads, head_dim).transpose(1, 2, 0, 3)
    scale = 1.0 / math.sqrt(head_dim)
    w = jnp.einsum("bhld,bhsd->bhls", q, k) * scale
    if attn_mask is not None:
        w = w + attn_mask
    w = jax.nn.softmax(w, axis=-1)
    o = jnp.einsum("bhls,bhsd->bhld", w, v)
    o = o.transpose(2, 0, 1, 3).reshape(tgt_len * bsz, embed_dim)
    o = o @ params["wo"].T + params["bo"]
    return o.reshape(tgt_len, bsz, embed_dim)


if __name__ == "__main__":
    # Small, consistent shapes
    embed_dim = 32
    num_heads = 4
    tgt_len = 8
    src_len = 8
    bsz = 2

    key0 = jax.random.PRNGKey(0)
    keys = jax.random.split(key0, 12)

    def init_linear(kw, kb, out_dim, in_dim):
        bound = 1.0 / math.sqrt(in_dim)
        w = jax.random.uniform(kw, (out_dim, in_dim), jnp.float32, -bound, bound)
        b = jax.random.uniform(kb, (out_dim,), jnp.float32, -bound, bound)
        return w, b

    wq, bq = init_linear(keys[0], keys[1], embed_dim, embed_dim)
    wk, bk = init_linear(keys[2], keys[3], embed_dim, embed_dim)
    wv, bv = init_linear(keys[4], keys[5], embed_dim, embed_dim)
    wo, bo = init_linear(keys[6], keys[7], embed_dim, embed_dim)
    params = dict(wq=wq, bq=bq, wk=wk, bk=bk, wv=wv, bv=bv, wo=wo, bo=bo)

    query = jax.random.normal(keys[8], (tgt_len, bsz, embed_dim), jnp.float32)
    key_in = jax.random.normal(keys[9], (src_len, bsz, embed_dim), jnp.float32)
    value = jax.random.normal(keys[10], (src_len, bsz, embed_dim), jnp.float32)

    # batched additive attention mask: (bsz, num_heads, tgt_len, src_len)
    attn_mask = jnp.where(
        jax.random.uniform(keys[11], (bsz, num_heads, tgt_len, src_len)) < 0.15,
        jnp.float32(-1e9),
        jnp.float32(0.0),
    )

    # Batched-mask path
    out = plain_mha_forward(query, key_in, value, params, num_heads, attn_mask)
    out = jax.block_until_ready(out)
    ref = reference_forward(query, key_in, value, params, num_heads, attn_mask)
    assert out.shape == (tgt_len, bsz, embed_dim)
    assert jnp.allclose(out, ref, atol=1e-4, rtol=1e-4), "mismatch vs reference (masked)"

    # No-mask path (compiles the mask-free kernel variant)
    out2 = plain_mha_forward(query, key_in, value, params, num_heads, None)
    out2 = jax.block_until_ready(out2)
    ref2 = reference_forward(query, key_in, value, params, num_heads, None)
    assert jnp.allclose(out2, ref2, atol=1e-4, rtol=1e-4), "mismatch vs reference (no mask)"

    print("KERNEL_OK")
</pallas_src>

<mosaic_0001>
module attributes {stable_mosaic.version = 11 : i64} {
  func.func @_matmul_bias_kernel(%arg0: i32, %arg1: i32, %arg2: i32, %arg3: i32, %arg4: memref<1x16x32xf32, #tpu.memory_space<vmem>>, %arg5: memref<1x32x32xf32, #tpu.memory_space<vmem>>, %arg6: memref<1x1x32xf32, #tpu.memory_space<vmem>>, %arg7: memref<1x16x32xf32, #tpu.memory_space<vmem>>, %arg8: memref<16x32xf32, #tpu.memory_space<vmem>>) attributes {dimension_semantics = [#tpu.dimension_semantics<parallel>, #tpu.dimension_semantics<parallel>, #tpu.dimension_semantics<parallel>, #tpu.dimension_semantics<arbitrary>], iteration_bounds = array<i64: 3, 1, 1, 1>, scalar_prefetch = 0 : i64, scratch_operands = 1 : i64, tpu.core_type = #tpu.core_type<tc>, window_params = [{transform_indices = @transform_0, window_bounds = array<i64: 1, 16, 32>}, {transform_indices = @transform_1, window_bounds = array<i64: 1, 32, 32>}, {transform_indices = @transform_2, window_bounds = array<i64: 1, 1, 32>}, {transform_indices = @transform_3, window_bounds = array<i64: 1, 16, 32>}]} {
    %c0_i32 = arith.constant 0 : i32
    %0 = arith.cmpi eq, %arg3, %c0_i32 : i32
    %1 = arith.extui %0 : i1 to i32
    %c0_i32_0 = arith.constant 0 : i32
    %2 = arith.cmpi ne, %1, %c0_i32_0 : i32
    scf.if %2 {
      %cst_12 = arith.constant 0.000000e+00 : f32
      %14 = vector.broadcast %cst_12 : f32 to vector<16x32xf32>
      %c0_13 = arith.constant 0 : index
      %c0_14 = arith.constant 0 : index
      %15 = vector.load %arg8[%c0_13, %c0_14] : memref<16x32xf32, #tpu.memory_space<vmem>>, vector<16x32xf32>
      tpu.vector_store %arg8[%c0_13, %c0_14], %14 {strides = array<i32>} : memref<16x32xf32, #tpu.memory_space<vmem>>, vector<16x32xf32>,
    } else {
    }
    %c0 = arith.constant 0 : index
    %c0_1 = arith.constant 0 : index
    %3 = vector.load %arg8[%c0, %c0_1] : memref<16x32xf32, #tpu.memory_space<vmem>>, vector<16x32xf32>
    %c0_2 = arith.constant 0 : index
    %c0_3 = arith.constant 0 : index
    %c0_4 = arith.constant 0 : index
    %4 = vector.load %arg4[%c0_2, %c0_3, %c0_4] : memref<1x16x32xf32, #tpu.memory_space<vmem>>, vector<1x16x32xf32>
    %5 = vector.shape_cast %4 : vector<1x16x32xf32> to vector<16x32xf32>
    %c0_5 = arith.constant 0 : index
    %c0_6 = arith.constant 0 : index
    %c0_7 = arith.constant 0 : index
    %6 = vector.load %arg5[%c0_5, %c0_6, %c0_7] : memref<1x32x32xf32, #tpu.memory_space<vmem>>, vector<1x32x32xf32>
    %7 = vector.shape_cast %6 : vector<1x32x32xf32> to vector<32x32xf32>
    %cst = arith.constant dense<0.000000e+00> : vector<16x32xf32>
    %8 = tpu.matmul %5, %7, %cst {dimension_numbers = #tpu.dot_dimension_numbers<[1], [0], [0], [1], [0, 0, 1, 1], [], []>} : vector<16x32xf32>, vector<32x32xf32>, vector<16x32xf32> -> vector<16x32xf32>
    %9 = arith.addf %3, %8 : vector<16x32xf32>
    %c0_8 = arith.constant 0 : index
    %c0_9 = arith.constant 0 : index
    %10 = vector.load %arg8[%c0_8, %c0_9] : memref<16x32xf32, #tpu.memory_space<vmem>>, vector<16x32xf32>
    tpu.vector_store %arg8[%c0_8, %c0_9], %9 {strides = array<i32>} : memref<16x32xf32, #tpu.memory_space<vmem>>, vector<16x32xf32>,
    %c0_i32_10 = arith.constant 0 : i32
    %11 = arith.cmpi eq, %arg3, %c0_i32_10 : i32
    %12 = arith.extui %11 : i1 to i32
    %c0_i32_11 = arith.constant 0 : i32
    %13 = arith.cmpi ne, %12, %c0_i32_11 : i32
    scf.if %13 {
      %c0_12 = arith.constant 0 : index
      %c0_13 = arith.constant 0 : index
      %14 = vector.load %arg8[%c0_12, %c0_13] : memref<16x32xf32, #tpu.memory_space<vmem>>, vector<16x32xf32>
      %c0_14 = arith.constant 0 : index
      %c0_15 = arith.constant 0 : index
      %c0_16 = arith.constant 0 : index
      %15 = vector.load %arg6[%c0_14, %c0_15, %c0_16] : memref<1x1x32xf32, #tpu.memory_space<vmem>>, vector<1x1x32xf32>
      %16 = vector.shape_cast %15 : vector<1x1x32xf32> to vector<1x32xf32>
      %17 = vector.broadcast %16 : vector<1x32xf32> to vector<16x32xf32>
      %18 = arith.addf %14, %17 : vector<16x32xf32>
      %c0_17 = arith.constant 0 : index
      %c0_18 = arith.constant 0 : index
      %c0_19 = arith.constant 0 : index
      %19 = vector.load %arg7[%c0_17, %c0_18, %c0_19] : memref<1x16x32xf32, #tpu.memory_space<vmem>>, vector<1x16x32xf32>
      %20 = vector.shape_cast %19 : vector<1x16x32xf32> to vector<16x32xf32>
      %21 = vector.shape_cast %18 : vector<16x32xf32> to vector<1x16x32xf32>
      tpu.vector_store %arg7[%c0_17, %c0_18, %c0_19], %21 {strides = array<i32>} : memref<1x16x32xf32, #tpu.memory_space<vmem>>, vector<1x16x32xf32>,
    } else {
    }
    return
  }
  func.func @transform_0(%arg0: i32, %arg1: i32, %arg2: i32, %arg3: i32) -> (i32, i32, i32) {
    %c0_i32 = arith.constant 0 : i32
    return %arg0, %arg1, %arg3 : i32, i32, i32
  }
  func.func @transform_1(%arg0: i32, %arg1: i32, %arg2: i32, %arg3: i32) -> (i32, i32, i32) {
    %c0_i32 = arith.constant 0 : i32
    return %arg0, %arg3, %arg2 : i32, i32, i32
  }
  func.func @transform_2(%arg0: i32, %arg1: i32, %arg2: i32, %arg3: i32) -> (i32, i32, i32) {
    %c0_i32 = arith.constant 0 : i32
    %c0_i32_0 = arith.constant 0 : i32
    return %arg0, %c0_i32, %arg2 : i32, i32, i32
  }
  func.func @transform_3(%arg0: i32, %arg1: i32, %arg2: i32, %arg3: i32) -> (i32, i32, i32) {
    %c0_i32 = arith.constant 0 : i32
    return %arg0, %arg1, %arg2 : i32, i32, i32
  }
}

</mosaic_0001>

<bundles_post_ra>
// kernel: tpu_custom_call.1
= control target key start
LH: loop header
LB: loop body
LE: loop exit
PB: predicated region body
PF: predicated region fallthrough
CT: control target
= control target key end

     0   :  { %8 = vsyncpa [#allocation4], 0  ;;  %s1113_s0 = inlined_call_operand.hbm [shape: f32[3,16,32], index: 0, kind: input, shape index: {}]   ;;  %s1114_s1 = inlined_call_operand.hbm [shape: f32[3,32,32], index: 1, kind: input, shape index: {}]   ;;  %s1115_s2 = inlined_call_operand.vmem [shape: f32[3,1,32], index: 2, kind: input, shape index: {}]   ;;  %s1116_s3 = inlined_call_operand.hbm [shape: f32[3,16,32], index: 3, kind: output, shape index: {}]  }
   0x1   :  { %10 = vsyncpa [#allocation4 + $0x1], 0 }
   0x2   :  { %11 = vsyncpa [#allocation7], 0 }
   0x3   :  { %13 = vsyncpa [#allocation7 + $0x1], 0 }
   0x4   :  { %14 = vsyncpa [#allocation5], 0 }
   0x5   :  { %16 = vsyncpa [#allocation5 + $0x1], 0  ;;  %s867_s12 = smov 0   ;;  %s869_s13 = smov 0  }
   0x6   :  { %s871_s14 = smov 0   ;;  %s873_s15 = smov 0  }
   0x7   :  { %s875_s16 = smov 0   ;;  %s877_s17 = smov 0  }
   0x8 LB: > { %s569_s18 = sadd.s32 4294967295, %s837_s17   ;;  %s570_s19 = sadd.s32 4294967294, %s837_s17   ;;  %s837_s17 = sphi %s877_s17, %s22_s17   ;;  %s833_s16 = sphi %s875_s16, %s1133_s16   ;;  %s829_s15 = sphi %s873_s15, %s1132_s15   ;;  %s825_s14 = sphi %s871_s14, %s1131_s14   ;;  %s821_s13 = sphi %s869_s13, %s1130_s13   ;;  %s817_s12 = sphi %s867_s12, %s1129_s12  }
   0x9   : > { %s48_s20 = sadd.s32 1, %s833_s16  ;;  %s59_s21 = sadd.s32 1, %s825_s14 }
   0xa   : > { %p50_p0 = scmp.ge.s32.totalorder %s48_s20, 3  ;;  %p66_p1 = scmp.ne.s32.totalorder %s825_s14, %s821_s13 }
   0xb   : > { %p67_p2 = scmp.eq.s32.totalorder %s837_s17, 0  ;;  %p72_p3 = scmp.ne.s32.totalorder %s821_s13, %s817_s12 }
   0xc   : > { %s1135_s20 = smov (%p50_p0, %s48_s20), 0  ;;  %p73_p5 = scmp.eq.s32.totalorder %s569_s18, 0 }
   0xd   : > { %p908_p4 = por %p67_p2, %p66_p1  ;;  %s52_s23 = ssub.s32 %s833_s16, %s1135_s20 }
   0xe   : > { %p158_p6 = scmp.eq.s32.totalorder %s569_s18, 2  ;;  %p57_p7 = scmp.eq.s32.totalorder %s52_s23, 0 }
   0xf   : > { %p914_p8 = por %p73_p5, %p72_p3  ;;  %p164_p10 = scmp.eq.s32.totalorder %s570_s19, 2 }
  0x10   : > { %p918_p9 = por %p158_p6, %p66_p1  ;;  %p636_p12 = scmp.lt.s32.totalorder %s837_s17, 3 }
  0x11   : > { %s1120_s24 = scalar_select %p914_p8, 1, 0 }
  0x12   : > { %s1121_s25 = scalar_select %p918_p9, 1, 0 }
  0x13   : > { %s923_s26 = scalar_select %p57_p7, %s825_s14, %s59_s21  }
  0x14   : > { %p925_p11 = por %p164_p10, %p72_p3  ;;  %s931_s28 = sand.u32 1, %s825_s14  }
  0x15   : > { %s573_s29 = sshll.u32 %s931_s28, 4  ;;  %s591_s30 = sshll.u32 %s833_s16, 8 }
  0x16   : > { %s1122_s27 = scalar_select %p925_p11, 1, 0 }
  0x17   : > { %s938_s6 = scalar_lea.hbm %s1113_s0, %s591_s30  ;;  %s188_s7 = scalar_lea.vmem [#allocation3], %s573_s29 }
  0x18   : > { %s198_s8 = sshll.u32 %s188_s7, 4  ;;  %p944_p13 = pnand %p636_p12, %p908_p4  ;;  %s940_s8 = int_to_ptr.vmem [resolvable:$true] %s198_s8 }
  0x19   : > { %s185_s10 = scalar_lea.sflag [#allocation4], %s931_s28  ;;  %s691_s11 = scalar_lea.hbm %s938_s6, 256 }
  0x1a   : > { %p692_p1 = scmp.ne.s32.totalorder %s938_s6, %s691_s11  ;;  %p693_p2 = pneg %p944_p13 }
  0x1b   : > { %s696_s21 = scalar_lea.hbm %s1113_s0, 768  ;;  %p697_p4 = scmp.lt.u32.totalorder %s938_s6, %s1113_s0 }
  0x1c   : > { %p694_p3 = pnand %p693_p2, %p692_p1  ;;  %p698_p6 = scmp.lt.u32.totalorder %s696_s21, %s691_s11 }
  0x1d   : > { %p700_p10 = scmp.lt.u32.totalorder %s691_s11, %s938_s6 }
  0x1e   : > { %p695_p5 = pneg %p694_p3  ;;  %p699_p7 = por %p698_p6, %p697_p4 }
  0x20   : > { %p701_p12 = por %p700_p10, %p699_p7 }
  0x22   : > { %p702_p0 = pnand %p701_p12, %p695_p5 }
  0x24   : > { %705 = shalt.err (!%p702_p0)
}
  0x25   : > { %s706_s29 = scalar_lea.vmem %s940_s8, 256  ;;  %s839_s30 = smov [#allocation3]  }
  0x26   : > { %p707_p1 = scmp.ne.s32.totalorder %s940_s8, %s706_s29  ;;  %s711_s4 = sshll.u32 %s839_s30, 4  ;;  %s712_s4 = int_to_ptr.vmem [resolvable:$false] %s711_s4 }
  0x27   : > { %s713_s5 = scalar_lea.vmem %s712_s4, 512  ;;  %p714_p9 = scmp.lt.s32.totalorder %s940_s8, %s712_s4 }
  0x28   : > { %p709_p3 = pnand %p707_p1, %p693_p2  ;;  %p715_p4 = scmp.lt.s32.totalorder %s713_s5, %s706_s29 }
  0x2a   : > { %p710_p11 = pneg %p709_p3  ;;  %p716_p6 = por %p715_p4, %p714_p9 }
  0x2c   : > { %p717_p7 = pnand %p716_p6, %p710_p11 }
  0x2e   : > { %720 = shalt.err (!%p717_p7)
}
  0x2f   : > { %s840_s7 = smov 128   ;;  %s841_s11 = smov 8  }
  0x30   : > { %628 = dma.hbm_to_vmem [thread:$0]  (!%p944_p13), %s938_s6, 256, %s940_s8, %s185_s10, %s840_s7, %s840_s7, %s841_s11  }
  0x31   : > { %p239_p9 = scmp.lt.s32.totalorder %s837_s17, 4  ;;  %s576_s18 = sshll.u32 %s931_s28, 5 }
  0x32   : > { %s592_s19 = sshll.u32 %s833_s16, 9  ;;  %p1124_p11 = scmp.ge.s32.totalorder %s837_s17, 1 }
  0x33   : > { %s992_s29 = scalar_lea.hbm %s1114_s1, %s592_s19  ;;  %s212_s30 = scalar_lea.vmem [#allocation6], %s576_s18 }
  0x34   : > { %p985_p0 = pnand %p1124_p11, %p239_p9  ;;  %s222_s4 = sshll.u32 %s212_s30, 4  ;;  %s994_s4 = int_to_ptr.vmem [resolvable:$true] %s222_s4 }
  0x35   : > { %s209_s6 = scalar_lea.sflag [#allocation7], %s931_s28  ;;  %s721_s8 = scalar_lea.hbm %s992_s29, 512 }
  0x36   : > { %p722_p5 = scmp.ne.s32.totalorder %s992_s29, %s721_s8  ;;  %s726_s19 = scalar_lea.hbm %s1114_s1, 1536 }
  0x37   : > { %p727_p1 = scmp.lt.u32.totalorder %s992_s29, %s1114_s1  ;;  %p728_p3 = scmp.lt.u32.totalorder %s726_s19, %s721_s8 }
  0x38   : > { %p724_p10 = pnand %p722_p5, %p693_p2  ;;  %p730_p6 = scmp.lt.u32.totalorder %s721_s8, %s992_s29 }
  0x39   : > { %p729_p4 = por %p728_p3, %p727_p1 }
  0x3a   : > { %p725_p12 = pneg %p724_p10 }
  0x3b   : > { %p731_p7 = por %p730_p6, %p729_p4 }
  0x3d   : > { %p732_p9 = pnand %p731_p7, %p725_p12 }
  0x3f   : > { %735 = shalt.err (!%p732_p9)
}
  0x40   : > { %s736_s18 = scalar_lea.vmem %s994_s4, 512  ;;  %s842_s30 = smov [#allocation6]  }
  0x41   : > { %p737_p11 = scmp.ne.s32.totalorder %s994_s4, %s736_s18  ;;  %s741_s10 = sshll.u32 %s842_s30, 4  ;;  %s742_s10 = int_to_ptr.vmem [resolvable:$false] %s741_s10 }
  0x42   : > { %s743_s5 = scalar_lea.vmem %s742_s10, 1024  ;;  %p744_p8 = scmp.lt.s32.totalorder %s994_s4, %s742_s10 }
  0x43   : > { %p739_p5 = pnand %p737_p11, %p693_p2  ;;  %p745_p1 = scmp.lt.s32.totalorder %s743_s5, %s736_s18 }
  0x45   : > { %p740_p10 = pneg %p739_p5  ;;  %p746_p3 = por %p745_p1, %p744_p8 }
  0x47   : > { %p747_p4 = pnand %p746_p3, %p740_p10 }
  0x49   : > { %750 = shalt.err (!%p747_p4)
}
  0x4a   : > { %631 = dma.hbm_to_vmem [thread:$0]  (!%p944_p13), %s992_s29, 512, %s994_s4, %s209_s6, %s840_s7, %s840_s7, %s841_s11  }
  0x4b   : > { %243 = sbr.rel (%p985_p0) target bundleno = 337 (0x151), region = 32  ;;  %s1028_s8 = sand.u32 (!%p985_p0), 1, %s821_s13  }
  0x4c   : > { %s580_s19 = sshll.u32 (!%p985_p0), %s1028_s8, 4  ;;  %s246_s9 = scalar_lea.sflag (!%p985_p0), [#allocation4], %s1028_s8 }
  0x4d   : > { %s249_s22 = scalar_lea.vmem (!%p985_p0), [#allocation3], %s580_s19  ;;  %p1126_p8 = scmp.ne.s32.totalorder (!%p985_p0), %s1120_s24, 0 }
  0x52   : > { %804 = dma.done.wait (%p1126_p8), %s246_s9, 256  }
  0x53   : > { %806 = vsyncadd (%p1126_p8), %s246_s9, 4294967040  ;;  %s581_s28 = sshll.u32 %s1028_s8, 5  ;;  %s255_s7 = scalar_lea.sflag [#allocation7], %s1028_s8 }
  0x54   : > { %s258_s11 = scalar_lea.vmem [#allocation6], %s581_s28 }
  0x55   : > { %808 = dma.done.wait (%p1126_p8), %s255_s7, 512  }
  0x56   : > { %810 = vsyncadd (%p1126_p8), %s255_s7, 4294966784  ;;  %vm305_vm0 = vcmask 261120   ;;  %v843_v0 = vmov 0.0   ;;  %v312_v1 = vld [vmem:[%s258_s11] sm:$0xff]  ;;  %v313_v2 = vld [vmem:[%s258_s11 + $0x8] sm:$0xff]  ;;  %p294_p13 = scmp.lt.s32.totalorder %s829_s15, 2 }
  0x57   : > { %307 = vst.msk [vmem:[#allocation2 + $0x8] sm:$0xff] %vm305_vm0, %v843_v0  ;;  %306 = vst.msk [vmem:[#allocation2] sm:$0xff] %vm305_vm0, %v843_v0  ;;  %v314_v3 = vld [vmem:[%s258_s11 + $0x10] sm:$0xff]  ;;  %v611_v4 = vpack.c.bf16 %v313_v2, %v312_v1  ;;  %v315_v5 = vld [vmem:[%s258_s11 + $0x18] sm:$0xff]  ;;  %s593_s6 = sshll.u32 %s829_s15, 8  ;;  %s291_s23 = scalar_lea.vmem [#allocation8], %s580_s19 }
  0x58   : > { %v310_v6 = vld [vmem:[%s249_s22] sm:$0xff]  ;;  %v615_v7 = vpack.c.bf16 %v315_v5, %v314_v3  ;;  %v311_v8 = vld [vmem:[%s249_s22 + $0x8] sm:$0xff]  ;;  %s295_s24 = scalar_select %p294_p13, %s829_s15, 2 }
  0x59   : > { %608 = vmatprep.mubr.msk.f32.mxu0 %vm305_vm0, %v310_v6  ;;  %612 = vmatprep.subr.bf16.mxu0 %v611_v4  ;;  %s435_s18 = sshll.u32 %s291_s23, 4  ;;  %s1061_s5 = scalar_lea.hbm %s1116_s3, %s593_s6  ;;  %s1063_s18 = int_to_ptr.vmem [resolvable:$true] %s435_s18 }
  0x5a   : > { %614 = vmatpush3.bf16.msra.mxu0 %v611_v4  ;;  %s299_s4 = scalar_lea.vmem %s1115_s2, %s295_s24  ;;  %s419_s15 = scalar_lea.sflag [#allocation5], %s1028_s8 }
  0x5b   : > { %616 = vmatprep.subr.bf16.mxu0 %v615_v7  ;;  %v585_v15 = vld [vmem:[%s299_s4] ss:$0 sm:$0xff]  ;;  %s751_s19 = scalar_lea.vmem %s1063_s18, 256  ;;  %p1127_p0 = scmp.ne.s32.totalorder %s1121_s25, 0 }
  0x5c   : > { %p752_p2 = scmp.ne.s32.totalorder %s1063_s18, %s751_s19  ;;  %s844_s9 = smov [#allocation8]  }
  0x5d   : > { %s755_s22 = sshll.u32 %s844_s9, 4  ;;  %s756_s22 = int_to_ptr.vmem [resolvable:$false] %s755_s22 }
  0x5e   : > { %618 = vmatpush3.bf16.msra.mxu0 %v615_v7  ;;  %v309_v9 = vld [vmem:[#allocation2 + $0x8] sm:$0xff]  ;;  %v308_v10 = vld [vmem:[#allocation2] sm:$0xff]  ;;  %p753_p12 = pnand %p752_p2, %p1127_p0  ;;  %s757_s28 = scalar_lea.vmem %s756_s22, 512 }
  0x5f   : > { %p758_p7 = scmp.lt.s32.totalorder %s1063_s18, %s756_s22  ;;  %p759_p9 = scmp.lt.s32.totalorder %s757_s28, %s751_s19 }
  0x60   : > { %p754_p6 = pneg %p753_p12 }
  0x61   : > { %609 = vmatmul.mubr.msk.f32.vlgmr.msra.gmra.mrb[0].mxu0 %vm305_vm0, %v311_v8  ;;  %p760_p11 = por %p759_p9, %p758_p7 }
  0x63   : > { %p761_p5 = pnand %p760_p11, %p754_p6 }
 0x134   : > { %v610_v11 = vpop.f32.mrb[0].mxu0 }
 0x135   : > { %v399_v12 = vadd.f32 %v610_v11, %v309_v9  ;;  %v389_v13 = vpop.f32.mrb[1].mxu0 }
 0x136   : > { %v398_v14 = vadd.f32 %v389_v13, %v308_v10 }
 0x137   : > { %401 = vst.msk [vmem:[#allocation2 + $0x8] sm:$0xff] %vm305_vm0, %v399_v12 }
 0x138   : > { %400 = vst.msk [vmem:[#allocation2] sm:$0xff] %vm305_vm0, %v398_v14 }
 0x13e   : > { %v406_v16 = vld [vmem:[#allocation2 + $0x8] sm:$0xff] }
 0x13f   : > { %v405_v17 = vld [vmem:[#allocation2] sm:$0xff]  ;;  %v415_v18 = vadd.f32 %v585_v15, %v406_v16 }
 0x140   : > { %v414_v19 = vadd.f32 %v585_v15, %v405_v17 }
 0x141   : > { %417 = vst.msk [vmem:[%s291_s23 + $0x8] sm:$0xff] %vm305_vm0, %v415_v18 }
 0x142   : > { %416 = vst.msk [vmem:[%s291_s23] sm:$0xff] %vm305_vm0, %v414_v19 }
 0x143   : > { %764 = shalt.err (!%p761_p5)
}
 0x144   : > { %s765_s7 = scalar_lea.hbm %s1061_s5, 256  ;;  %s769_s21 = scalar_lea.hbm %s1116_s3, 768 }
 0x145   : > { %p766_p10 = scmp.ne.s32.totalorder %s1061_s5, %s765_s7  ;;  %p770_p4 = scmp.lt.u32.totalorder %s1061_s5, %s1116_s3 }
 0x146   : > { %p771_p8 = scmp.lt.u32.totalorder %s769_s21, %s765_s7  ;;  %p773_p2 = scmp.lt.u32.totalorder %s765_s7, %s1061_s5 }
 0x147   : > { %p767_p1 = pnand %p766_p10, %p1127_p0 }
 0x148   : > { %p772_p13 = por %p771_p8, %p770_p4 }
 0x149   : > { %p768_p3 = pneg %p767_p1 }
 0x14a   : > { %p774_p12 = por %p773_p2, %p772_p13 }
 0x14c   : > { %p775_p6 = pnand %p774_p12, %p768_p3 }
 0x14e   : > { %778 = shalt.err (!%p775_p6)
}
 0x14f   : > { %s845_s6 = smov 128   ;;  %s846_s23 = smov 8  }
 0x150   : > { %623 = dma.vmem_to_hbm [thread:$0]  (%p1127_p0), %s1063_s18, 256, %s1061_s5, %s419_s15, %s845_s6, %s845_s6, %s846_s23  }
 0x151 PF: > { %p637_p7 = scmp.ge.s32.totalorder %s837_s17, 2  ;;  %s450_s30 = sand.u32 1, %s817_s12  }
 0x152   : > { %p1128_p9 = scmp.ne.s32.totalorder %s1122_s27, 0  ;;  %s451_s10 = scalar_lea.sflag [#allocation5], %s450_s30 }
 0x154   : > { %p633_p11 = pnand %p637_p7, %p1128_p9 }
 0x156   : > { %812 = dma.done.wait (!%p633_p11), %s451_s10, 256  }
 0x157   : > { %814 = vsyncadd (!%p633_p11), %s451_s10, 4294967040  ;;  %s22_s17 = sadd.s32 1, %s837_s17   ;;  %s1129_s12 = smov %s821_s13 }
 0x158   : > { %p19_p5 = scmp.ge.s32.totalorder %s22_s17, 5   ;;  %s1130_s13 = smov %s825_s14 }
 0x159   : > { %s1131_s14 = smov %s923_s26  ;;  %s1132_s15 = smov %s833_s16 }
 0x15a   : > { %s1133_s16 = smov %s1135_s20  ;;  %21 = sbr.rel (!%p19_p5) target bundleno = 8 (0x8), region = 101 }
 0x161   :  { %456 = vsyncpa [#allocation4], 1 }
 0x162   :  { %458 = vsyncpa [#allocation4 + $0x1], 1 }
 0x163   :  { %459 = vsyncpa [#allocation7], 1 }
 0x164   :  { %461 = vsyncpa [#allocation7 + $0x1], 1 }
 0x165   :  { %462 = vsyncpa [#allocation5], 1 }
 0x166   :  { %464 = vsyncpa [#allocation5 + $0x1], 1 }

</bundles_post_ra>
